<compile_context>
chip_gen: v7x
topology: tpu7x:2x2x1
jax: 0.10.0
libtpu: 0.0.40
codegen_flags: <defaults>
</compile_context>

<pallas_src>
import math

import jax
import jax.numpy as jnp
from jax import lax
from jax.experimental import pallas as pl
from jax.experimental.pallas import tpu as pltpu

SCALE = 1
KS = int(math.pow(2, SCALE))          # 2
NBANDS = KS * KS                      # 4


def _haar_filters():
    """Deterministic 2x2 Haar wavelet filter bank, shape (4, 2, 2)."""
    ll = jnp.array([[0.5, 0.5], [0.5, 0.5]], dtype=jnp.float32)
    lh = jnp.array([[0.5, 0.5], [-0.5, -0.5]], dtype=jnp.float32)
    hl = jnp.array([[0.5, -0.5], [0.5, -0.5]], dtype=jnp.float32)
    hh = jnp.array([[0.5, -0.5], [-0.5, 0.5]], dtype=jnp.float32)
    return jnp.stack([ll, lh, hl, hh], axis=0)


def _haar_butterfly_kernel(x_ref, o_ref):
    # x_ref: (4, TC, TS) quadrant-major rows: 0->x(0,0), 1->x(0,1), 2->x(1,0), 3->x(1,1)
    # o_ref: (4, TC, TS) band-major rows: LL, LH, HL, HH
    x00 = x_ref[0].astype(jnp.float32)
    x01 = x_ref[1].astype(jnp.float32)
    x10 = x_ref[2].astype(jnp.float32)
    x11 = x_ref[3].astype(jnp.float32)
    # 2-level Haar butterfly on the VPU (no MXU, no concat temporaries).
    p = x00 + x01
    m = x00 - x01
    t = x10 + x11
    u = x10 - x11
    od = o_ref.dtype
    o_ref[0] = (0.5 * (p + t)).astype(od)   # LL
    o_ref[1] = (0.5 * (p - t)).astype(od)   # LH
    o_ref[2] = (0.5 * (m + u)).astype(od)   # HL
    o_ref[3] = (0.5 * (m - u)).astype(od)   # HH


@jax.jit
def wavelet_transform_dec(x):
    """Forward pass of WaveletTransform(scale=1, dec=True, transpose=True)."""
    N, C, H, W = x.shape
    assert H % KS == 0 and W % KS == 0, (H, W)
    Hh, Wh = H // KS, W // KS
    S = Hh * Wh
    itemsize = jnp.dtype(x.dtype).itemsize

    # Space-to-depth: (N, 4, C, S) with quadrant index p*2+q and flat spatial
    # column hh*Wh + wh.  One XLA transpose pass; allow_input_fusion below lets
    # XLA fold it into the pallas input read when possible.
    xr = (
        x.reshape(N, C, Hh, KS, Wh, KS)
        .transpose(0, 3, 5, 1, 2, 4)
        .reshape(N, NBANDS, C, S)
    )

    # ---- tile selection (target ~2 MiB per input block, lane-dense) ----
    budget = 2 << 20
    if NBANDS * C * 128 * itemsize > budget and C > 8:
        # Very large C: block channels in multiples of 8 so a single block
        # cannot blow past VMEM (64 MiB physical on v7x).
        tc = (budget // (NBANDS * 128 * itemsize)) // 8 * 8
        tc = int(min(max(tc, 8), C))
    else:
        tc = C
    ts = int(max(128, (budget // (NBANDS * tc * itemsize)) // 128 * 128))
    if ts >= S:
        ts = S                      # full dim -> always a legal block shape
    n_cb = pl.cdiv(C, tc)
    n_sb = pl.cdiv(S, ts)
    # Megacore (v7x): make sure there are >=2 parallel blocks when possible.
    if N * n_cb * n_sb < 2 and S >= 2 * 128:
        ts = ((S // 2 + 127) // 128) * 128
        n_sb = pl.cdiv(S, ts)

    # Spatial-tile axis leading so the 2-TC split never lands on a degenerate
    # axis; pure loop-order choice on single-TC v5e/v6e.
    grid = (n_sb, N, n_cb)
    block = (None, NBANDS, tc, ts)
    imap = lambda sb, n, cb: (n, 0, cb, sb)

    # VMEM limit from the real footprint (in + out, double-buffered) + headroom.
    block_bytes = NBANDS * tc * ts * itemsize
    vmem_needed = 2 * 2 * block_bytes
    vmem_limit = int(min(max(vmem_needed + (4 << 20), 16 << 20), 48 << 20))

    flops = 12 * N * C * S                        # 8 add/sub + 4 mul per 2x2 block
    bytes_accessed = 2 * N * NBANDS * C * S * itemsize

    y = pl.pallas_call(
        _haar_butterfly_kernel,
        out_shape=jax.ShapeDtypeStruct((N, NBANDS, C, S), x.dtype),
        grid=grid,
        in_specs=[pl.BlockSpec(block, imap)],
        out_specs=pl.BlockSpec(block, imap),
        compiler_params=pltpu.CompilerParams(
            dimension_semantics=("parallel", "parallel", "parallel"),
            vmem_limit_bytes=vmem_limit,
            allow_input_fusion=[True],
        ),
        cost_estimate=pl.CostEstimate(
            flops=flops, transcendentals=0, bytes_accessed=bytes_accessed),
    )(xr)

    # Rows are already band-major (f*C + c); this reshape is metadata-only.
    return y.reshape(N, NBANDS * C, Hh, Wh)


def wavelet_transform_ref(x, haar):
    """Pure-JAX reference replicating the PyTorch grouped Conv2d + reorder."""
    N, C, H, W = x.shape
    # PyTorch conv weight: (C*4, 1, ks, ks), group-major, row c*4+f = haar[f]
    w = jnp.tile(haar[:, None, :, :], (C, 1, 1, 1))
    out = lax.conv_general_dilated(
        x.astype(jnp.float32),
        w,
        window_strides=(KS, KS),
        padding="VALID",
        dimension_numbers=("NCHW", "OIHW", "NCHW"),
        feature_group_count=C,
    )
    # forward(): view(N, C, 4, H', W').transpose(1, 2).view(N, nc, H', W')
    osz = out.shape
    out = (
        out.reshape(osz[0], C, -1, osz[2], osz[3])
        .transpose(0, 2, 1, 3, 4)
        .reshape(osz)
    )
    return out


if __name__ == "__main__":
    haar = _haar_filters()

    # Case 1: module-consistent small shapes.
    N, C, H, W = 2, 4, 16, 16
    x = jax.random.normal(jax.random.PRNGKey(0), (N, C, H, W), dtype=jnp.float32)
    out = jax.block_until_ready(wavelet_transform_dec(x))
    ref = jax.block_until_ready(wavelet_transform_ref(x, haar))
    assert out.shape == (N, C * NBANDS, H // KS, W // KS), out.shape
    assert out.dtype == x.dtype, out.dtype
    assert jnp.allclose(out, ref, atol=1e-5, rtol=1e-5), float(
        jnp.max(jnp.abs(out - ref))
    )

    # Case 2: N=1, larger plane -> exercises multi-tile grid / megacore split.
    x2 = jax.random.normal(jax.random.PRNGKey(1), (1, 3, 32, 64), dtype=jnp.float32)
    out2 = jax.block_until_ready(wavelet_transform_dec(x2))
    ref2 = jax.block_until_ready(wavelet_transform_ref(x2, haar))
    assert jnp.allclose(out2, ref2, atol=1e-5, rtol=1e-5), float(
        jnp.max(jnp.abs(out2 - ref2))
    )

    print("KERNEL_OK")
</pallas_src>

<mosaic_0001>
module attributes {stable_mosaic.version = 11 : i64} {
  func.func @_haar_butterfly_kernel(%arg0: i32, %arg1: i32, %arg2: i32, %arg3: memref<1x4x4x64xf32, #tpu.memory_space<vmem>>, %arg4: memref<1x4x4x64xf32, #tpu.memory_space<vmem>>) attributes {dimension_semantics = [#tpu.dimension_semantics<parallel>, #tpu.dimension_semantics<parallel>, #tpu.dimension_semantics<parallel>], iteration_bounds = array<i64: 1, 2, 1>, scalar_prefetch = 0 : i64, scratch_operands = 0 : i64, tpu.core_type = #tpu.core_type<tc>, window_params = [{transform_indices = @transform_0, window_bounds = array<i64: 1, 4, 4, 64>}, {transform_indices = @transform_1, window_bounds = array<i64: 1, 4, 4, 64>}]} {
    %c0 = arith.constant 0 : index
    %c0_0 = arith.constant 0 : index
    %c0_1 = arith.constant 0 : index
    %c0_2 = arith.constant 0 : index
    %0 = vector.load %arg3[%c0, %c0_0, %c0_1, %c0_2] : memref<1x4x4x64xf32, #tpu.memory_space<vmem>>, vector<1x1x4x64xf32>
    %1 = vector.shape_cast %0 : vector<1x1x4x64xf32> to vector<4x64xf32>
    %c0_3 = arith.constant 0 : index
    %c1 = arith.constant 1 : index
    %c0_4 = arith.constant 0 : index
    %c0_5 = arith.constant 0 : index
    %2 = vector.load %arg3[%c0_3, %c1, %c0_4, %c0_5] : memref<1x4x4x64xf32, #tpu.memory_space<vmem>>, vector<1x1x4x64xf32>
    %3 = vector.shape_cast %2 : vector<1x1x4x64xf32> to vector<4x64xf32>
    %c0_6 = arith.constant 0 : index
    %c2 = arith.constant 2 : index
    %c0_7 = arith.constant 0 : index
    %c0_8 = arith.constant 0 : index
    %4 = vector.load %arg3[%c0_6, %c2, %c0_7, %c0_8] : memref<1x4x4x64xf32, #tpu.memory_space<vmem>>, vector<1x1x4x64xf32>
    %5 = vector.shape_cast %4 : vector<1x1x4x64xf32> to vector<4x64xf32>
    %c0_9 = arith.constant 0 : index
    %c3 = arith.constant 3 : index
    %c0_10 = arith.constant 0 : index
    %c0_11 = arith.constant 0 : index
    %6 = vector.load %arg3[%c0_9, %c3, %c0_10, %c0_11] : memref<1x4x4x64xf32, #tpu.memory_space<vmem>>, vector<1x1x4x64xf32>
    %7 = vector.shape_cast %6 : vector<1x1x4x64xf32> to vector<4x64xf32>
    %8 = arith.addf %1, %3 : vector<4x64xf32>
    %9 = arith.subf %1, %3 : vector<4x64xf32>
    %10 = arith.addf %5, %7 : vector<4x64xf32>
    %11 = arith.subf %5, %7 : vector<4x64xf32>
    %12 = arith.addf %8, %10 : vector<4x64xf32>
    %cst = arith.constant 5.000000e-01 : f32
    %13 = vector.broadcast %cst : f32 to vector<4x64xf32>
    %14 = arith.mulf %13, %12 : vector<4x64xf32>
    %c0_12 = arith.constant 0 : index
    %c0_13 = arith.constant 0 : index
    %c0_14 = arith.constant 0 : index
    %c0_15 = arith.constant 0 : index
    %15 = vector.load %arg4[%c0_12, %c0_13, %c0_14, %c0_15] : memref<1x4x4x64xf32, #tpu.memory_space<vmem>>, vector<1x1x4x64xf32>
    %16 = vector.shape_cast %15 : vector<1x1x4x64xf32> to vector<4x64xf32>
    %17 = vector.shape_cast %14 : vector<4x64xf32> to vector<1x1x4x64xf32>
    tpu.vector_store %arg4[%c0_12, %c0_13, %c0_14, %c0_15], %17 {strides = array<i32>} : memref<1x4x4x64xf32, #tpu.memory_space<vmem>>, vector<1x1x4x64xf32>,
    %18 = arith.subf %8, %10 : vector<4x64xf32>
    %cst_16 = arith.constant 5.000000e-01 : f32
    %19 = vector.broadcast %cst_16 : f32 to vector<4x64xf32>
    %20 = arith.mulf %19, %18 : vector<4x64xf32>
    %c0_17 = arith.constant 0 : index
    %c1_18 = arith.constant 1 : index
    %c0_19 = arith.constant 0 : index
    %c0_20 = arith.constant 0 : index
    %21 = vector.load %arg4[%c0_17, %c1_18, %c0_19, %c0_20] : memref<1x4x4x64xf32, #tpu.memory_space<vmem>>, vector<1x1x4x64xf32>
    %22 = vector.shape_cast %21 : vector<1x1x4x64xf32> to vector<4x64xf32>
    %23 = vector.shape_cast %20 : vector<4x64xf32> to vector<1x1x4x64xf32>
    tpu.vector_store %arg4[%c0_17, %c1_18, %c0_19, %c0_20], %23 {strides = array<i32>} : memref<1x4x4x64xf32, #tpu.memory_space<vmem>>, vector<1x1x4x64xf32>,
    %24 = arith.addf %9, %11 : vector<4x64xf32>
    %cst_21 = arith.constant 5.000000e-01 : f32
    %25 = vector.broadcast %cst_21 : f32 to vector<4x64xf32>
    %26 = arith.mulf %25, %24 : vector<4x64xf32>
    %c0_22 = arith.constant 0 : index
    %c2_23 = arith.constant 2 : index
    %c0_24 = arith.constant 0 : index
    %c0_25 = arith.constant 0 : index
    %27 = vector.load %arg4[%c0_22, %c2_23, %c0_24, %c0_25] : memref<1x4x4x64xf32, #tpu.memory_space<vmem>>, vector<1x1x4x64xf32>
    %28 = vector.shape_cast %27 : vector<1x1x4x64xf32> to vector<4x64xf32>
    %29 = vector.shape_cast %26 : vector<4x64xf32> to vector<1x1x4x64xf32>
    tpu.vector_store %arg4[%c0_22, %c2_23, %c0_24, %c0_25], %29 {strides = array<i32>} : memref<1x4x4x64xf32, #tpu.memory_space<vmem>>, vector<1x1x4x64xf32>,
    %30 = arith.subf %9, %11 : vector<4x64xf32>
    %cst_26 = arith.constant 5.000000e-01 : f32
    %31 = vector.broadcast %cst_26 : f32 to vector<4x64xf32>
    %32 = arith.mulf %31, %30 : vector<4x64xf32>
    %c0_27 = arith.constant 0 : index
    %c3_28 = arith.constant 3 : index
    %c0_29 = arith.constant 0 : index
    %c0_30 = arith.constant 0 : index
    %33 = vector.load %arg4[%c0_27, %c3_28, %c0_29, %c0_30] : memref<1x4x4x64xf32, #tpu.memory_space<vmem>>, vector<1x1x4x64xf32>
    %34 = vector.shape_cast %33 : vector<1x1x4x64xf32> to vector<4x64xf32>
    %35 = vector.shape_cast %32 : vector<4x64xf32> to vector<1x1x4x64xf32>
    tpu.vector_store %arg4[%c0_27, %c3_28, %c0_29, %c0_30], %35 {strides = array<i32>} : memref<1x4x4x64xf32, #tpu.memory_space<vmem>>, vector<1x1x4x64xf32>,
    return
  }
  func.func @transform_0(%arg0: i32, %arg1: i32, %arg2: i32) -> (i32, i32, i32, i32) {
    %c0_i32 = arith.constant 0 : i32
    %c0_i32_0 = arith.constant 0 : i32
    return %arg1, %c0_i32, %arg2, %arg0 : i32, i32, i32, i32
  }
  func.func @transform_1(%arg0: i32, %arg1: i32, %arg2: i32) -> (i32, i32, i32, i32) {
    %c0_i32 = arith.constant 0 : i32
    %c0_i32_0 = arith.constant 0 : i32
    return %arg1, %c0_i32, %arg2, %arg0 : i32, i32, i32, i32
  }
}

</mosaic_0001>

<bundles_post_ra>
// kernel: wavelet_transform_dec.1
= control target key start
LH: loop header
LB: loop body
LE: loop exit
PB: predicated region body
PF: predicated region fallthrough
CT: control target
= control target key end

     0   :  { %s377_s6 = smov 0   ;;  %s379_s7 = smov 0   ;;  %s410_s0 = inlined_call_operand.vmem [shape: f32[2,4,4,64], index: 0, kind: input, shape index: {}]   ;;  %s411_s1 = inlined_call_operand.vmem [shape: f32[2,4,4,64], index: 1, kind: output, shape index: {}]  }
   0x1   :  { %s381_s8 = smov 0  }
   0x2 LB: > { %s26_s9 = sadd.s32 1, %s361_s7  ;;  %p304_p0 = scmp.ge.s32.totalorder %s365_s8, 1  ;;  %s365_s8 = sphi %s381_s8, %s11_s8   ;;  %s361_s7 = sphi %s379_s7, %s413_s7   ;;  %s357_s6 = sphi %s377_s6, %s412_s6  }
   0x3   : > { %p28_p1 = scmp.ge.s32.totalorder %s26_s9, 2  ;;  %p120_p2 = scmp.lt.s32.totalorder %s365_s8, 3 }
   0x5   : > { %s415_s9 = smov (%p28_p1, %s26_s9), 0  ;;  %p121_p3 = pnand %p304_p0, %p120_p2 }
   0x6   : > { %p152_p4 = scmp.lt.s32.totalorder (!%p121_p3), %s357_s6, 1  ;;  %vm187_vm0 = vcmask (!%p121_p3), 519168  }
   0x7   : > { %124 = sbr.rel (%p121_p3) target bundleno = 27 (0x1b), region = 24 }
   0xe   : > { %s417_s6 = smov (!%p152_p4, %s357_s6), 1 }
   0xf   : > { %s317_s10 = sshll.u32 %s417_s6, 4 }
  0x10   : > { %s162_s13 = scalar_lea.vmem %s410_s0, %s317_s10  ;;  %s173_s16 = scalar_lea.vmem %s411_s1, %s317_s10 }
  0x11   : > { %v174_v0 = vld [vmem:[%s162_s13] sm:$0xf]  ;;  %v309_v1 = vld [vmem:[%s162_s13 + $0x4] sm:$0xf]  ;;  %v310_v2 = vld [vmem:[%s162_s13 + $0x8] sm:$0xf] }
  0x12   : > { %v311_v3 = vld [vmem:[%s162_s13 + $0xc] sm:$0xf]  ;;  %v181_v4 = vadd.f32 %v309_v1, %v174_v0  ;;  %v182_v5 = vsub.f32 %v174_v0, %v309_v1 }
  0x13   : > { %v183_v6 = vadd.f32 %v311_v3, %v310_v2  ;;  %v184_v7 = vsub.f32 %v310_v2, %v311_v3 }
  0x15   : > { %v185_v8 = vadd.f32 %v183_v6, %v181_v4  ;;  %v189_v9 = vsub.f32 %v181_v4, %v183_v6  ;;  %v193_v10 = vadd.f32 %v184_v7, %v182_v5  ;;  %v197_v11 = vsub.f32 %v182_v5, %v184_v7 }
  0x17   : > { %v186_v12 = vmul.f32 0.5, %v185_v8  ;;  %v190_v13 = vmul.f32 0.5, %v189_v9  ;;  %v194_v14 = vmul.f32 0.5, %v193_v10  ;;  %v198_v15 = vmul.f32 0.5, %v197_v11 }
  0x19   : > { %188 = vst.msk [vmem:[%s173_s16] sm:$0xf] %vm187_vm0, %v186_v12  ;;  %312 = vst.msk [vmem:[%s173_s16 + $0x4] sm:$0xf] %vm187_vm0, %v190_v13 }
  0x1a   : > { %313 = vst.msk [vmem:[%s173_s16 + $0x8] sm:$0xf] %vm187_vm0, %v194_v14  ;;  %314 = vst.msk [vmem:[%s173_s16 + $0xc] sm:$0xf] %vm187_vm0, %v198_v15 }
  0x1b PF: > { %s11_s8 = sadd.s32 1, %s365_s8   ;;  %s412_s6 = smov %s361_s7 }
  0x1c   : > { %p8_p5 = scmp.ge.s32.totalorder %s11_s8, 4   ;;  %s413_s7 = smov %s415_s9 }
  0x1e   :  { %10 = sbr.rel (!%p8_p5) target bundleno = 2 (0x2), region = 60 }

</bundles_post_ra>
